<compile_context>
chip_gen: v7x
topology: tpu7x:2x2x1
jax: 0.10.0
libtpu: 0.0.40
codegen_flags: <defaults>
</compile_context>

<pallas_src>
import functools
import math

import jax
import jax.numpy as jnp
from jax.experimental import pallas as pl
from jax.experimental.pallas import tpu as pltpu


def _clip_loss_kernel(
    tab_ref,       # (TB, E) f32  raw tab rows for this block
    tsn_t_ref,     # (E, N)  f32  normalized ts, transposed, resident
    tsn_blk_ref,   # (TB, E) f32  normalized ts rows aligned with this block (diag dot)
    diag_ref,      # (1, N)  f32  precomputed diag(S)/T   (only read when margin != 0)
    o_ref,         # (1, 1)  f32  scalar loss (written on the last step)
    acc_ref,       # (1, 1)  f32  scratch: sum log(rowsum) - 2*sum s_ii
    colsum_ref,    # (1, N)  f32  scratch: accumulated column sums of exp(S/T)
    *,
    inv_temp,
    margin_over_temp,
    n_rows,
    block_rows,
    has_remainder,
):
    i = pl.program_id(0)
    nb = pl.num_programs(0)
    use_margin = margin_over_temp != 0.0          # static (Python) branch

    @pl.when(i == 0)
    def _init():
        acc_ref[...] = jnp.zeros_like(acc_ref)
        colsum_ref[...] = jnp.zeros_like(colsum_ref)

    tab = tab_ref[...]
    if has_remainder:
        # Zero the padded tail rows before they touch the MXU / EUP.
        row_ok = (jax.lax.broadcasted_iota(jnp.int32, (block_rows, 1), 0)
                  + i * block_rows) < n_rows
        tab = jnp.where(row_ok, tab, 0.0)

    # L2-normalize this tab block and fold 1/temperature into the same row scale
    # (single (TB, E) multiply; matches F.normalize eps=1e-12).
    scale = jax.lax.rsqrt(
        jnp.maximum(jnp.sum(tab * tab, axis=1, keepdims=True), 1e-24)) * inv_temp
    tab_ns = tab * scale                                        # (TB, E)

    # (TB, E) @ (E, N) on the MXU — standard orientation, f32 accumulate. Result is S/T.
    sim = jax.lax.dot_general(
        tab_ns, tsn_t_ref[...],
        dimension_numbers=(((1,), (0,)), ((), ())),
        preferred_element_type=jnp.float32)                     # (TB, N)

    # diag(S)/T for this block: rowwise dot against the matching ts_n rows (VPU only).
    s_ii = jnp.sum(tab_ns * tsn_blk_ref[...], axis=1, keepdims=True)   # (TB, 1)

    e = jnp.exp(sim)                                            # single big EUP pass
    row_sum = jnp.sum(e, axis=1, keepdims=True)                 # (TB, 1)

    if use_margin:
        # Diagonal-only margin correction: e_ii -> e_ii * exp(-m/T).
        corr_scale = math.exp(-margin_over_temp) - 1.0
        row_sum = row_sum + corr_scale * jnp.exp(s_ii)
        s_ii = s_ii - margin_over_temp

    if has_remainder:
        log_rs = jnp.where(row_ok, jnp.log(row_sum), 0.0)
        s_term = jnp.where(row_ok, s_ii, 0.0)
        e_cols = e * row_ok.astype(jnp.float32)
    else:
        log_rs = jnp.log(row_sum)
        s_term = s_ii
        e_cols = e

    # -log(diag/rowsum) = log(rowsum) - s_ii ; s_ii appears again in the column term.
    acc_ref[...] = acc_ref[...] + (jnp.sum(log_rs) - 2.0 * jnp.sum(s_term))
    colsum_ref[...] = colsum_ref[...] + jnp.sum(e_cols, axis=0, keepdims=True)

    @pl.when(i == nb - 1)
    def _finalize():
        cs = colsum_ref[...]
        if use_margin:
            # Lane-oriented diagonal correction of the column sums, applied once.
            cs = cs + (math.exp(-margin_over_temp) - 1.0) * jnp.exp(diag_ref[...])
        o_ref[...] = (acc_ref[...] + jnp.sum(jnp.log(cs))) * (1.0 / (2.0 * n_rows))


def _pick_row_tile(n):
    # Prefer MXU/lane-friendly tiles that divide N exactly (no masking needed).
    for t in (512, 256, 128):
        if n % t == 0:
            return t
    if n <= 1024:
        return n            # single full-array block (always BlockSpec-legal, <= 4 MiB sim tile)
    return 256              # cdiv grid + in-kernel row-validity masking for the tail block


@functools.partial(jax.jit, static_argnames=("temperature", "margin"))
def clip_loss(tab_unique, ts_anchor, *, temperature=1.0, margin=0.0):
    """tab_unique, ts_anchor: (N, E).  Returns scalar f32 CLIP loss."""
    N, E = tab_unique.shape
    temperature = float(temperature)
    margin = float(margin)
    inv_temp = 1.0 / temperature

    tab = tab_unique.astype(jnp.float32)
    ts = ts_anchor.astype(jnp.float32)

    # One-time prep (tiny XLA ops): normalize ts once, keep it in both orientations.
    ts_n = ts * jax.lax.rsqrt(
        jnp.maximum(jnp.sum(ts * ts, axis=1, keepdims=True), 1e-24))
    ts_n_t = ts_n.T                                            # (E, N), resident MXU rhs

    if margin != 0.0:
        # diag(S)/T in lane orientation, used only for the colsum margin fix at finalize.
        tab_n = tab * jax.lax.rsqrt(
            jnp.maximum(jnp.sum(tab * tab, axis=1, keepdims=True), 1e-24))
        diag_row = (jnp.sum(tab_n * ts_n, axis=1) * inv_temp).reshape(1, N)
    else:
        diag_row = jnp.zeros((1, N), jnp.float32)              # never read in-kernel

    tb = _pick_row_tile(N)
    n_blocks = pl.cdiv(N, tb)
    has_remainder = (N % tb) != 0

    kernel = functools.partial(
        _clip_loss_kernel,
        inv_temp=inv_temp,
        margin_over_temp=margin * inv_temp,
        n_rows=N,
        block_rows=tb,
        has_remainder=has_remainder,
    )

    # VMEM budget: double-buffered (tab, ts_n) row blocks + resident ts_n^T/diag +
    # colsum scratch + (TB, N) sim/exp intermediates, with ~2x headroom.
    est = 2 * 4 * (4 * tb * E + 2 * E * N + 3 * 8 * N + 4 * tb * N)
    vmem_limit = max(32 * 1024 * 1024, min(int(est), 128 * 1024 * 1024))

    out = pl.pallas_call(
        kernel,
        out_shape=jax.ShapeDtypeStruct((1, 1), jnp.float32),
        grid_spec=pltpu.PrefetchScalarGridSpec(
            num_scalar_prefetch=0,
            grid=(n_blocks,),
            in_specs=[
                pl.BlockSpec((tb, E), lambda i: (i, 0)),       # tab rows (raw)
                pl.BlockSpec((E, N), lambda i: (0, 0)),        # ts_n^T, resident
                pl.BlockSpec((tb, E), lambda i: (i, 0)),       # ts_n rows (diag dot)
                pl.BlockSpec((1, N), lambda i: (0, 0)),        # diag(S)/T (margin only)
            ],
            out_specs=pl.BlockSpec((1, 1), lambda i: (0, 0)),
            scratch_shapes=[
                pltpu.VMEM((1, 1), jnp.float32),               # scalar accumulator
                pltpu.VMEM((1, N), jnp.float32),               # column exp-sum accumulator
            ],
        ),
        compiler_params=pltpu.CompilerParams(
            dimension_semantics=("arbitrary",),                # single reduction axis
            vmem_limit_bytes=vmem_limit,
        ),
    )(tab, ts_n_t, ts_n, diag_row)
    return out[0, 0]


def clip_loss_ref(tab_unique, ts_anchor, *, temperature=1.0, margin=0.0):
    """Plain-JAX reference mirroring the PyTorch forward exactly."""
    eps = 1e-12
    tab_n = tab_unique / jnp.maximum(
        jnp.linalg.norm(tab_unique, axis=1, keepdims=True), eps)
    ts_n = ts_anchor / jnp.maximum(
        jnp.linalg.norm(ts_anchor, axis=1, keepdims=True), eps)
    sim = tab_n @ ts_n.T
    sim = sim - jnp.eye(sim.shape[0], dtype=sim.dtype) * margin
    sim = sim / temperature
    e = jnp.exp(sim)
    x1 = jnp.diag(e) / jnp.sum(e, axis=1)
    x2 = jnp.diag(e) / jnp.sum(e, axis=0)
    return (-jnp.mean(jnp.log(x1)) - jnp.mean(jnp.log(x2))) / 2.0


if __name__ == "__main__":
    N = 16      # batch (contrastive pairs)
    E = 32      # embedding dim
    temperature = 0.5
    margin = 0.1

    key = jax.random.PRNGKey(0)
    k_tab, k_ts = jax.random.split(key)
    tab_unique = jax.random.normal(k_tab, (N, E), jnp.float32)
    ts_anchor = jax.random.normal(k_ts, (N, E), jnp.float32)

    # margin != 0 path
    loss = clip_loss(tab_unique, ts_anchor, temperature=temperature, margin=margin)
    loss = jax.block_until_ready(loss)
    ref = clip_loss_ref(tab_unique, ts_anchor, temperature=temperature, margin=margin)
    assert jnp.allclose(loss, ref, rtol=1e-5, atol=1e-5), (loss, ref)

    # margin == 0 fast path
    loss0 = clip_loss(tab_unique, ts_anchor, temperature=temperature, margin=0.0)
    loss0 = jax.block_until_ready(loss0)
    ref0 = clip_loss_ref(tab_unique, ts_anchor, temperature=temperature, margin=0.0)
    assert jnp.allclose(loss0, ref0, rtol=1e-5, atol=1e-5), (loss0, ref0)

    print("KERNEL_OK")
</pallas_src>

<mosaic_0001>
module attributes {stable_mosaic.version = 11 : i64} {
  func.func @_clip_loss_kernel(%arg0: i32, %arg1: memref<16x32xf32, #tpu.memory_space<vmem>>, %arg2: memref<32x16xf32, #tpu.memory_space<vmem>>, %arg3: memref<16x32xf32, #tpu.memory_space<vmem>>, %arg4: memref<1x16xf32, #tpu.memory_space<vmem>>, %arg5: memref<1x1xf32, #tpu.memory_space<vmem>>, %arg6: memref<1x1xf32, #tpu.memory_space<vmem>>, %arg7: memref<1x16xf32, #tpu.memory_space<vmem>>) attributes {dimension_semantics = [#tpu.dimension_semantics<arbitrary>], iteration_bounds = array<i64: 1>, scalar_prefetch = 0 : i64, scratch_operands = 2 : i64, tpu.core_type = #tpu.core_type<tc>, window_params = [{transform_indices = @transform_0, window_bounds = array<i64: 16, 32>}, {pipeline_mode = #tpu.pipeline_mode<synchronous>, transform_indices = @transform_1, window_bounds = array<i64: 32, 16>}, {transform_indices = @transform_2, window_bounds = array<i64: 16, 32>}, {pipeline_mode = #tpu.pipeline_mode<synchronous>, transform_indices = @transform_3, window_bounds = array<i64: 1, 16>}, {pipeline_mode = #tpu.pipeline_mode<synchronous>, transform_indices = @transform_4, window_bounds = array<i64: 1, 1>}]} {
    %c0_i32 = arith.constant 0 : i32
    %0 = arith.cmpi eq, %arg0, %c0_i32 : i32
    %1 = arith.extui %0 : i1 to i32
    %c0_i32_0 = arith.constant 0 : i32
    %2 = arith.cmpi ne, %1, %c0_i32_0 : i32
    scf.if %2 {
      %cst_27 = arith.constant 0.000000e+00 : f32
      %52 = vector.broadcast %cst_27 : f32 to vector<1x1xf32>
      %c0_28 = arith.constant 0 : index
      %c0_29 = arith.constant 0 : index
      %53 = vector.load %arg6[%c0_28, %c0_29] : memref<1x1xf32, #tpu.memory_space<vmem>>, vector<1x1xf32>
      tpu.vector_store %arg6[%c0_28, %c0_29], %52 {strides = array<i32>} : memref<1x1xf32, #tpu.memory_space<vmem>>, vector<1x1xf32>,
      %cst_30 = arith.constant 0.000000e+00 : f32
      %54 = vector.broadcast %cst_30 : f32 to vector<1x16xf32>
      %c0_31 = arith.constant 0 : index
      %c0_32 = arith.constant 0 : index
      %55 = vector.load %arg7[%c0_31, %c0_32] : memref<1x16xf32, #tpu.memory_space<vmem>>, vector<1x16xf32>
      tpu.vector_store %arg7[%c0_31, %c0_32], %54 {strides = array<i32>} : memref<1x16xf32, #tpu.memory_space<vmem>>, vector<1x16xf32>,
    } else {
    }
    %c0 = arith.constant 0 : index
    %c0_1 = arith.constant 0 : index
    %3 = vector.load %arg1[%c0, %c0_1] : memref<16x32xf32, #tpu.memory_space<vmem>>, vector<16x32xf32>
    %4 = arith.mulf %3, %3 : vector<16x32xf32>
    %cst = arith.constant dense<0.000000e+00> : vector<16xf32>
    %5 = vector.multi_reduction <add>, %4, %cst [1] : vector<16x32xf32> to vector<16xf32>
    %6 = vector.shape_cast %5 : vector<16xf32> to vector<16x1xf32>
    %cst_2 = arith.constant 1.000000e-24 : f32
    %7 = vector.broadcast %cst_2 : f32 to vector<16x1xf32>
    %8 = arith.maximumf %6, %7 : vector<16x1xf32>
    %9 = math.rsqrt %8 : vector<16x1xf32>
    %cst_3 = arith.constant 2.000000e+00 : f32
    %10 = vector.broadcast %cst_3 : f32 to vector<16x1xf32>
    %11 = arith.mulf %9, %10 : vector<16x1xf32>
    %12 = vector.broadcast %11 : vector<16x1xf32> to vector<16x32xf32>
    %13 = arith.mulf %3, %12 : vector<16x32xf32>
    %c0_4 = arith.constant 0 : index
    %c0_5 = arith.constant 0 : index
    %14 = vector.load %arg2[%c0_4, %c0_5] : memref<32x16xf32, #tpu.memory_space<vmem>>, vector<32x16xf32>
    %cst_6 = arith.constant dense<0.000000e+00> : vector<16x16xf32>
    %15 = tpu.matmul %13, %14, %cst_6 {dimension_numbers = #tpu.dot_dimension_numbers<[1], [0], [0], [1], [0, 0, 1, 1], [], []>} : vector<16x32xf32>, vector<32x16xf32>, vector<16x16xf32> -> vector<16x16xf32>
    %c0_7 = arith.constant 0 : index
    %c0_8 = arith.constant 0 : index
    %16 = vector.load %arg3[%c0_7, %c0_8] : memref<16x32xf32, #tpu.memory_space<vmem>>, vector<16x32xf32>
    %17 = arith.mulf %13, %16 : vector<16x32xf32>
    %cst_9 = arith.constant dense<0.000000e+00> : vector<16xf32>
    %18 = vector.multi_reduction <add>, %17, %cst_9 [1] : vector<16x32xf32> to vector<16xf32>
    %19 = vector.shape_cast %18 : vector<16xf32> to vector<16x1xf32>
    %20 = math.exp %15 : vector<16x16xf32>
    %cst_10 = arith.constant dense<0.000000e+00> : vector<16xf32>
    %21 = vector.multi_reduction <add>, %20, %cst_10 [1] : vector<16x16xf32> to vector<16xf32>
    %22 = vector.shape_cast %21 : vector<16xf32> to vector<16x1xf32>
    %23 = math.exp %19 : vector<16x1xf32>
    %cst_11 = arith.constant -0.181269243 : f32
    %24 = vector.broadcast %cst_11 : f32 to vector<16x1xf32>
    %25 = arith.mulf %24, %23 : vector<16x1xf32>
    %26 = arith.addf %22, %25 : vector<16x1xf32>
    %cst_12 = arith.constant 2.000000e-01 : f32
    %27 = vector.broadcast %cst_12 : f32 to vector<16x1xf32>
    %28 = arith.subf %19, %27 : vector<16x1xf32>
    %29 = math.log %26 : vector<16x1xf32>
    %c0_13 = arith.constant 0 : index
    %c0_14 = arith.constant 0 : index
    %30 = vector.load %arg6[%c0_13, %c0_14] : memref<1x1xf32, #tpu.memory_space<vmem>>, vector<1x1xf32>
    %31 = vector.shape_cast %29 : vector<16x1xf32> to vector<1x16x1xf32>
    %cst_15 = arith.constant dense<0.000000e+00> : vector<1xf32>
    %32 = vector.multi_reduction <add>, %31, %cst_15 [1, 2] : vector<1x16x1xf32> to vector<1xf32>
    %33 = vector.shape_cast %32 : vector<1xf32> to vector<1x1x1xf32>
    %34 = vector.extract %33[0, 0, 0] : f32 from vector<1x1x1xf32>
    %35 = vector.shape_cast %28 : vector<16x1xf32> to vector<1x16x1xf32>
    %cst_16 = arith.constant dense<0.000000e+00> : vector<1xf32>
    %36 = vector.multi_reduction <add>, %35, %cst_16 [1, 2] : vector<1x16x1xf32> to vector<1xf32>
    %37 = vector.shape_cast %36 : vector<1xf32> to vector<1x1x1xf32>
    %38 = vector.extract %37[0, 0, 0] : f32 from vector<1x1x1xf32>
    %cst_17 = arith.constant 2.000000e+00 : f32
    %39 = arith.mulf %cst_17, %38 : f32
    %40 = arith.subf %34, %39 : f32
    %41 = vector.broadcast %40 : f32 to vector<1x1xf32>
    %42 = arith.addf %30, %41 : vector<1x1xf32>
    %c0_18 = arith.constant 0 : index
    %c0_19 = arith.constant 0 : index
    %43 = vector.load %arg6[%c0_18, %c0_19] : memref<1x1xf32, #tpu.memory_space<vmem>>, vector<1x1xf32>
    tpu.vector_store %arg6[%c0_18, %c0_19], %42 {strides = array<i32>} : memref<1x1xf32, #tpu.memory_space<vmem>>, vector<1x1xf32>,
    %c0_20 = arith.constant 0 : index
    %c0_21 = arith.constant 0 : index
    %44 = vector.load %arg7[%c0_20, %c0_21] : memref<1x16xf32, #tpu.memory_space<vmem>>, vector<1x16xf32>
    %cst_22 = arith.constant dense<0.000000e+00> : vector<16xf32>
    %45 = vector.multi_reduction <add>, %20, %cst_22 [0] : vector<16x16xf32> to vector<16xf32>
    %46 = vector.shape_cast %45 : vector<16xf32> to vector<1x16xf32>
    %47 = arith.addf %44, %46 : vector<1x16xf32>
    %c0_23 = arith.constant 0 : index
    %c0_24 = arith.constant 0 : index
    %48 = vector.load %arg7[%c0_23, %c0_24] : memref<1x16xf32, #tpu.memory_space<vmem>>, vector<1x16xf32>
    tpu.vector_store %arg7[%c0_23, %c0_24], %47 {strides = array<i32>} : memref<1x16xf32, #tpu.memory_space<vmem>>, vector<1x16xf32>,
    %c0_i32_25 = arith.constant 0 : i32
    %49 = arith.cmpi eq, %arg0, %c0_i32_25 : i32
    %50 = arith.extui %49 : i1 to i32
    %c0_i32_26 = arith.constant 0 : i32
    %51 = arith.cmpi ne, %50, %c0_i32_26 : i32
    scf.if %51 {
      %c0_27 = arith.constant 0 : index
      %c0_28 = arith.constant 0 : index
      %52 = vector.load %arg7[%c0_27, %c0_28] : memref<1x16xf32, #tpu.memory_space<vmem>>, vector<1x16xf32>
      %c0_29 = arith.constant 0 : index
      %c0_30 = arith.constant 0 : index
      %53 = vector.load %arg4[%c0_29, %c0_30] : memref<1x16xf32, #tpu.memory_space<vmem>>, vector<1x16xf32>
      %54 = math.exp %53 : vector<1x16xf32>
      %cst_31 = arith.constant -0.181269243 : f32
      %55 = vector.broadcast %cst_31 : f32 to vector<1x16xf32>
      %56 = arith.mulf %55, %54 : vector<1x16xf32>
      %57 = arith.addf %52, %56 : vector<1x16xf32>
      %c0_32 = arith.constant 0 : index
      %c0_33 = arith.constant 0 : index
      %58 = vector.load %arg6[%c0_32, %c0_33] : memref<1x1xf32, #tpu.memory_space<vmem>>, vector<1x1xf32>
      %59 = math.log %57 : vector<1x16xf32>
      %60 = vector.shape_cast %59 : vector<1x16xf32> to vector<1x1x16xf32>
      %cst_34 = arith.constant dense<0.000000e+00> : vector<1xf32>
      %61 = vector.multi_reduction <add>, %60, %cst_34 [1, 2] : vector<1x1x16xf32> to vector<1xf32>
      %62 = vector.shape_cast %61 : vector<1xf32> to vector<1x1x1xf32>
      %63 = vector.extract %62[0, 0, 0] : f32 from vector<1x1x1xf32>
      %64 = vector.broadcast %63 : f32 to vector<1x1xf32>
      %65 = arith.addf %58, %64 : vector<1x1xf32>
      %cst_35 = arith.constant 3.125000e-02 : f32
      %66 = vector.broadcast %cst_35 : f32 to vector<1x1xf32>
      %67 = arith.mulf %65, %66 : vector<1x1xf32>
      %c0_36 = arith.constant 0 : index
      %c0_37 = arith.constant 0 : index
      %68 = vector.load %arg5[%c0_36, %c0_37] : memref<1x1xf32, #tpu.memory_space<vmem>>, vector<1x1xf32>
      tpu.vector_store %arg5[%c0_36, %c0_37], %67 {strides = array<i32>} : memref<1x1xf32, #tpu.memory_space<vmem>>, vector<1x1xf32>,
    } else {
    }
    return
  }
  func.func @transform_0(%arg0: i32) -> (i32, i32) {
    %c0_i32 = arith.constant 0 : i32
    %c0_i32_0 = arith.constant 0 : i32
    return %arg0, %c0_i32 : i32, i32
  }
  func.func @transform_1(%arg0: i32) -> (i32, i32) {
    %c0_i32 = arith.constant 0 : i32
    %c0_i32_0 = arith.constant 0 : i32
    %c0_i32_1 = arith.constant 0 : i32
    return %c0_i32, %c0_i32_0 : i32, i32
  }
  func.func @transform_2(%arg0: i32) -> (i32, i32) {
    %c0_i32 = arith.constant 0 : i32
    %c0_i32_0 = arith.constant 0 : i32
    return %arg0, %c0_i32 : i32, i32
  }
  func.func @transform_3(%arg0: i32) -> (i32, i32) {
    %c0_i32 = arith.constant 0 : i32
    %c0_i32_0 = arith.constant 0 : i32
    %c0_i32_1 = arith.constant 0 : i32
    return %c0_i32, %c0_i32_0 : i32, i32
  }
  func.func @transform_4(%arg0: i32) -> (i32, i32) {
    %c0_i32 = arith.constant 0 : i32
    %c0_i32_0 = arith.constant 0 : i32
    %c0_i32_1 = arith.constant 0 : i32
    return %c0_i32, %c0_i32_0 : i32, i32
  }
}

</mosaic_0001>

<bundles_post_ra>
// kernel: clip_loss.1
= control target key start
LH: loop header
LB: loop body
LE: loop exit
PB: predicated region body
PF: predicated region fallthrough
CT: control target
= control target key end

     0   :  { %vm30_vm0 = vcmask 261120   ;;  %s413_s0 = inlined_call_operand.vmem [shape: f32[16,32], index: 0, kind: input, shape index: {}]   ;;  %s414_s1 = inlined_call_operand.vmem [shape: f32[32,16], index: 1, kind: input, shape index: {}]   ;;  %s415_s2 = inlined_call_operand.vmem [shape: f32[16,32], index: 2, kind: input, shape index: {}]   ;;  %s416_s3 = inlined_call_operand.vmem [shape: f32[1,16], index: 3, kind: input, shape index: {}]   ;;  %s417_s4 = inlined_call_operand.hbm [shape: f32[1,1], index: 4, kind: output, shape index: {}]  }
   0x1   :  { %v26_v0 = vld [vmem:[%s413_s0] sm:$0xff]  ;;  %v27_v1 = vld [vmem:[%s413_s0 + $0x8] sm:$0xff] }
   0x2   :  { %9 = vsyncpa [#allocation5], 0  ;;  %v28_v2 = vmul.f32 %v26_v0, %v26_v0  ;;  %v29_v3 = vmul.f32 %v27_v1, %v27_v1  ;;  %v45_v6 = vld [vmem:[%s414_s1] sm:$0xff]  ;;  %v46_v7 = vld [vmem:[%s414_s1 + $0x8] sm:$0xff]  ;;  %vm24_vm1 = vcmask 122880   ;;  %v329_v28 = vmov 0.0  }
   0x3   :  { %v269_v8 = vpack.c.bf16 %v46_v7, %v45_v6  ;;  %v47_v9 = vld [vmem:[%s414_s1 + $0x10] sm:$0xff]  ;;  %v48_v10 = vld [vmem:[%s414_s1 + $0x18] sm:$0xff]  ;;  %v130_v18 = vld [vmem:[%s415_s2] sm:$0xff]  ;;  %25 = vst.msk [vmem:[#allocation3] sm:$0x1] %vm24_vm1, %v329_v28  ;;  %vm144_vm2 = vcmask 130048  }
   0x4   :  { %v31_v4 = vsel %vm30_vm0, %v28_v2, 0.0  ;;  %v34_v5 = vsel %vm30_vm0, %v29_v3, 0.0  ;;  %v273_v11 = vpack.c.bf16 %v48_v10, %v47_v9  ;;  %v131_v23 = vld [vmem:[%s415_s2 + $0x8] sm:$0xff]  ;;  %vm166_vm3 = vcmask 7168   ;;  %v212_v53 = vld [vmem:[%s416_s3] sm:$0x1] }
   0x5   :  { %32 = vadd.xlane.f32.xlu0 %v31_v4  ;;  %270 = vmatprep.subr.bf16.mxu0 %v269_v8  ;;  %v213_v54 = vmul.f32 1.442695, %v212_v53  ;;  %vm22_vm4 = vcmask 0   ;;  %s330_s8 = smov [#allocation4]  }
   0x6   :  { %272 = vmatpush3.bf16.msra.mxu0 %v269_v8  ;;  %23 = vst.msk [vmem:[#allocation2] sm:$0x1] %vm22_vm4, %v329_v28  ;;  %s240_s9 = sshll.u32 %s330_s8, 4  ;;  %s241_s9 = int_to_ptr.vmem [resolvable:$true] %s240_s9 }
   0x7   :  { %274 = vmatprep.subr.bf16.mxu0 %v273_v11  ;;  %s305_s10 = scalar_lea.vmem %s241_s9, 16  ;;  %s309_s11 = scalar_lea.vmem %s241_s9, 32 }
   0x8   :  { %p306_p0 = scmp.ne.s32.totalorder %s241_s9, %s305_s10  ;;  %p310_p1 = scmp.lt.s32.totalorder %s241_s9, %s241_s9 }
   0x9   :  { %35 = vadd.xlane.f32.xlu0 %v34_v5  ;;  %p311_p2 = scmp.lt.s32.totalorder %s309_s11, %s305_s10 }
   0xa   :  { %276 = vmatpush3.bf16.msra.mxu0 %v273_v11  ;;  %v197_v50 = vld [vmem:[#allocation3] sm:$0x1] }
   0xb   :  { %p312_p3 = por %p311_p2, %p310_p1 }
   0xd   :  { %p313_p4 = pnand %p312_p3, %p306_p0 }
  0x92   :  { %v33_v12 = vpop.xlane.xlu0 %32 }
  0x93   :  { %v37_v13 = vmax.f32 %v33_v12, 1e-24 }
  0x95   :  { %285 = vrsqrt.f32 %v37_v13 }
  0x96   :  { %v36_v14 = vpop.xlane.xlu0 %35 }
  0x97   :  { %v38_v15 = vmax.f32 %v36_v14, 1e-24 }
  0x99   :  { %287 = vrsqrt.f32 %v38_v15 }
  0x9f   :  { %v286_v16 = vpop.eup %285 }
  0xa0   :  { %v41_v17 = vmul.f32 2.0, %v286_v16 }
  0xa2   :  { %v43_v19 = vmul.f32 %v41_v17, %v26_v0 }
  0xa3   :  { %v288_v20 = vpop.eup %287 }
  0xa4   :  { %v42_v21 = vmul.f32 2.0, %v288_v20  ;;  %266 = vmatprep.mubr.msk.f32.mxu0 %vm30_vm0, %v43_v19  ;;  %v132_v22 = vmul.f32 %v130_v18, %v43_v19 }
  0xa6   :  { %v44_v24 = vmul.f32 %v42_v21, %v27_v1  ;;  %v134_v25 = vsel %vm30_vm0, %v132_v22, 0.0 }
  0xa7   :  { %135 = vadd.xlane.f32.xlu1 %v134_v25 }
  0xa8   :  { %267 = vmatmul.mubr.msk.f32.vlgmr.msra.gmra.mrb[0].mxu0 %vm30_vm0, %v44_v24  ;;  %v133_v26 = vmul.f32 %v131_v23, %v44_v24 }
  0xaa   :  { %v137_v27 = vsel %vm30_vm0, %v133_v26, 0.0 }
  0xab   :  { %138 = vadd.xlane.f32.xlu1 %v137_v27 }
 0x134   :  { %v136_v30 = vpop.xlane.xlu1 %135 }
 0x135   :  { %v250_v36 = vadd.f32 -0.2, %v136_v30  ;;  %v151_v56 = vmul.f32 1.442695, %v136_v30 }
 0x137   :  { %v179_v43 = vsel %vm166_vm3, %v250_v36, 0.0  ;;  %v165_v36 = vld [vmem:[#allocation2] sm:$0x1] }
 0x138   :  { %v139_v34 = vpop.xlane.xlu1 %138 }
 0x139   :  { %v251_v35 = vadd.f32 -0.2, %v139_v34  ;;  %v153_v55 = vmul.f32 1.442695, %v139_v34 }
 0x13b   :  { %v180_v40 = vsel %vm166_vm3, %v251_v35, 0.0 }
 0x13c   :  { %v181_v44 = vadd.f32 %v180_v40, %v179_v43 }
 0x17b   :  { %v268_v29 = vpop.f32.mrb[0].mxu0 }
 0x17c   :  { %v142_v31 = vmul.f32 1.442695, %v268_v29  ;;  %v121_v32 = vpop.f32.mrb[1].mxu0 }
 0x17d   :  { %v140_v33 = vmul.f32 1.442695, %v121_v32 }
 0x17e   :  { %289 = vpow2.f32 %v142_v31 }
 0x17f   :  { %291 = vpow2.f32 %v140_v33 }
 0x180   :  { %293 = vpow2.f32 %v213_v54 }
 0x181   :  { %295 = vpow2.f32 %v153_v55 }
 0x182   :  { %297 = vpow2.f32 %v151_v56 }
 0x188   :  { %v290_v37 = vpop.eup %289 }
 0x189   :  { %v292_v38 = vpop.eup %291  ;;  %v148_v39 = vsel %vm144_vm2, %v290_v37, 0.0 }
 0x18a   :  { %149 = vadd.xlane.f32.xlu1 %v148_v39  ;;  %v145_v41 = vsel %vm144_vm2, %v292_v38, 0.0  ;;  %v294_v57 = vpop.eup %293 }
 0x18b   :  { %146 = vadd.xlane.f32.xlu0 %v145_v41  ;;  %v198_v42 = vadd.f32 %v148_v39, %v145_v41  ;;  %v296_v58 = vpop.eup %295  ;;  %v215_v60 = vmul.f32 -0.18126924, %v294_v57 }
 0x18c   :  { %v298_v59 = vpop.eup %297  ;;  %v156_v61 = vmul.f32 -0.18126924, %v296_v58 }
 0x18d   :  { %v199_v45 = vrot.slane %v198_v42, 4  ;;  %v155_v0 = vmul.f32 -0.18126924, %v298_v59 }
 0x18e   :  { %182 = vadd.xlane.f32.xlu1 %v181_v44 }
 0x18f   :  { %v200_v46 = vadd.f32 %v199_v45, %v198_v42 }
 0x191   :  { %v201_v47 = vrot.slane %v200_v46, 2 }
 0x193   :  { %v202_v48 = vadd.f32 %v201_v47, %v200_v46 }
 0x195   :  { %v203_v49 = vrot.slane %v202_v48, 1 }
 0x197   :  { %v204_v51 = vadd.f32 %v203_v49, %v202_v48 }
 0x199   :  { %v205_v52 = vadd.f32 %v204_v51, %v197_v50 }
 0x19b   :  { %207 = vst.msk [vmem:[#allocation3] sm:$0x1] %vm24_vm1, %v205_v52 }
 0x1a2   :  { %v211_v62 = vld [vmem:[#allocation3] sm:$0x1] }
 0x1a3   :  { %v216_v4 = vadd.f32 %v215_v60, %v211_v62 }
 0x217   :  { %v150_v63 = vpop.xlane.xlu1 %149 }
 0x218   :  { %v158_v1 = vadd.f32 %v156_v61, %v150_v63  ;;  %v147_v2 = vpop.xlane.xlu0 %146 }
 0x219   :  { %v157_v3 = vadd.f32 %v155_v0, %v147_v2 }
 0x21a   :  { %299 = vlog2.f32 %v158_v1 }
 0x21b   :  { %301 = vlog2.f32 %v157_v3  ;;  %v183_v15 = vpop.xlane.xlu1 %182 }
 0x21c   :  { %303 = vlog2.f32 %v216_v4  ;;  %v184_v16 = vrot.slane %v183_v15, 4 }
 0x21e   :  { %v185_v17 = vadd.f32 %v184_v16, %v183_v15 }
 0x220   :  { %v186_v18 = vrot.slane %v185_v17, 2 }
 0x222   :  { %v187_v22 = vadd.f32 %v186_v18, %v185_v17 }
 0x224   :  { %v300_v5 = vpop.eup %299  ;;  %v188_v29 = vrot.slane %v187_v22, 1 }
 0x225   :  { %v302_v6 = vpop.eup %301  ;;  %v164_v7 = vmul.f32 0.6931472, %v300_v5 }
 0x226   :  { %v162_v8 = vmul.f32 0.6931472, %v302_v6  ;;  %v304_v9 = vpop.eup %303  ;;  %v189_v34 = vadd.f32 %v188_v29, %v187_v22 }
 0x227   :  { %v168_v10 = vsel %vm166_vm3, %v164_v7, 0.0  ;;  %v219_v13 = vmul.f32 0.6931472, %v304_v9 }
 0x228   :  { %v167_v11 = vsel %vm166_vm3, %v162_v8, 0.0 }
 0x229   :  { %v169_v12 = vadd.f32 %v168_v10, %v167_v11  ;;  %v220_v14 = vsel %vm24_vm1, %v219_v13, 0.0 }
 0x22b   :  { %170 = vadd.xlane.f32.xlu0 %v169_v12 }
 0x22f   :  { %221 = vadd.xlane.f32.xlu0 %v220_v14 }
 0x2b8   :  { %v171_v19 = vpop.xlane.xlu0 %170 }
 0x2b9   :  { %v172_v20 = vrot.slane %v171_v19, 4 }
 0x2bb   :  { %v173_v21 = vadd.f32 %v172_v20, %v171_v19 }
 0x2bc   :  { %v222_v23 = vpop.xlane.xlu0 %221 }
 0x2bd   :  { %v174_v24 = vrot.slane %v173_v21, 2  ;;  %v223_v25 = vrot.slane %v222_v23, 4 }
 0x2bf   :  { %v224_v26 = vadd.f32 %v223_v25, %v222_v23  ;;  %v175_v27 = vadd.f32 %v174_v24, %v173_v21 }
 0x2c1   :  { %v225_v30 = vrot.slane %v224_v26, 2  ;;  %v176_v31 = vrot.slane %v175_v27, 1 }
 0x2c3   :  { %v226_v32 = vadd.f32 %v225_v30, %v224_v26  ;;  %v177_v33 = vadd.f32 %v176_v31, %v175_v27 }
 0x2c5   :  { %277 = vpush %v177_v33  ;;  %v227_v28 = vrot.slane %v226_v32, 1 }
 0x2c6   :  { %279 = vpush %v189_v34 }
 0x2c7   :  { %v228_v35 = vadd.f32 %v227_v28, %v226_v32 }
 0x2c9   :  { %281 = vpush %v228_v35 }
 0x2f6   :  { %s278_s3 = spop %277 }
 0x2f7   :  { %s280_s30 = spop %279 }
 0x2f8   :  { %s191_s5 = smul.f32 2.0, %s280_s30 }
 0x2fa   :  { %s192_s6 = ssub.f32 %s278_s3, %s191_s5  ;;  %s282_s7 = spop %281 }
 0x2fb   :  { %v230_v40 = vstv %s282_s7 }
 0x2fc   :  { %v193_v37 = vstv %s192_s6 }
 0x2fd   :  { %v194_v38 = vadd.f32 %v193_v37, %v165_v36 }
 0x2ff   :  { %196 = vst.msk [vmem:[#allocation2] sm:$0x1] %vm22_vm4, %v194_v38 }
 0x306   :  { %v217_v39 = vld [vmem:[#allocation2] sm:$0x1] }
 0x307   :  { %v231_v41 = vadd.f32 %v230_v40, %v217_v39 }
 0x309   :  { %v232_v42 = vmul.f32 0.03125, %v231_v41 }
 0x30b   :  { %233 = vst.msk [vmem:[#allocation4] sm:$0x1] %vm22_vm4, %v232_v42 }
 0x30c   :  { %316 = shalt.err (!%p313_p4)
}
 0x30d   :  { %s317_s14 = scalar_lea.hbm %s417_s4, 16 }
 0x30e   :  { %p318_p5 = scmp.ne.s32.totalorder %s417_s4, %s317_s14  ;;  %p321_p6 = scmp.lt.u32.totalorder %s317_s14, %s417_s4 }
 0x310   :  { %p323_p7 = pnand %p321_p6, %p318_p5 }
 0x312   :  { %326 = shalt.err (!%p323_p7)
}
 0x313   :  { %243 = dma.vmem_to_hbm [thread:$0]  %s241_s9, 16, %s417_s4, [#allocation5]  }
 0x314   :  { %327 = dma.done.wait [#allocation5], 16  }
 0x315   :  { %328 = vsyncadd [#allocation5], 4294967280 }
 0x316   :  { %247 = vsyncpa [#allocation5], 1 }

</bundles_post_ra>
